<compile_context>
chip_gen: v7x
topology: tpu7x:2x2x1
jax: 0.10.0
libtpu: 0.0.40
codegen_flags: <defaults>
</compile_context>

<pallas_src>
import jax
import jax.numpy as jnp
from jax.experimental import pallas as pl
from jax.experimental.pallas import tpu as pltpu

_LANES = 128        # vreg lane width (fast axis)
_SUBLANES = 8       # f32 sublane count
_MAX_TILE_ROWS = 512  # 512 x 128 f32 = 256 KiB per tile; double-buffered
                      # in + out ~1 MiB -> comfortable even in v7x's smaller VMEM


def _affine_kernel(slope_ref, intercept_ref, x_ref, o_ref):
    # Entire 4-layer forward collapsed into one fused multiply-add on the VPU.
    # slope / intercept are SMEM scalars, broadcast into the vector op.
    o_ref[...] = x_ref[...] * slope_ref[0, 0] + intercept_ref[0, 0]


def line2_forward(xs, params):
    """Forward pass of `line2`. xs: (N, 1) float32 -> (N, 1) float32."""
    w1, b1 = params["w1"], params["b1"]
    w2, b2 = params["w2"], params["b2"]
    w3, b3 = params["w3"], params["b3"]
    w4, b4 = params["w4"], params["b4"]

    # Effective affine map (parameter-only, computed once by XLA).
    slope = (w1 @ w2 @ w3 @ w4).reshape(1, 1).astype(jnp.float32)
    intercept = (((b1 @ w2 + b2) @ w3 + b3) @ w4 + b4).reshape(1, 1).astype(
        jnp.float32)

    n = xs.shape[0]
    flat = xs.reshape(-1).astype(jnp.float32)

    # Lane-dense layout: batch -> (rows, 128); pad rows to sublane/tile multiple.
    rows = max(1, -(-n // _LANES))
    tile_rows = min(_MAX_TILE_ROWS, -(-rows // _SUBLANES) * _SUBLANES)
    rows_padded = -(-rows // tile_rows) * tile_rows
    total = rows_padded * _LANES

    x2d = jnp.zeros((total,), jnp.float32).at[:n].set(flat)
    x2d = x2d.reshape(rows_padded, _LANES)

    grid = (rows_padded // tile_rows,)
    smem_spec = pl.BlockSpec(memory_space=pltpu.MemorySpace.SMEM)

    out2d = pl.pallas_call(
        _affine_kernel,
        out_shape=jax.ShapeDtypeStruct((rows_padded, _LANES), jnp.float32),
        grid=grid,
        in_specs=[
            smem_spec,                                            # slope
            smem_spec,                                            # intercept
            pl.BlockSpec((tile_rows, _LANES), lambda i: (i, 0)),  # x tile
        ],
        out_specs=pl.BlockSpec((tile_rows, _LANES), lambda i: (i, 0)),
        compiler_params=pltpu.CompilerParams(
            dimension_semantics=("parallel",),  # v7x: shard tiles over 2 TCs
        ),
        cost_estimate=pl.CostEstimate(
            flops=2 * total,            # one fma per element
            transcendentals=0,
            bytes_accessed=8 * total + 8,
        ),
    )(slope, intercept, x2d)

    return out2d.reshape(-1)[:n].reshape(n, 1)


def init_params(key):
    """Deterministic standard-normal init matching the torch.randn shapes."""
    ks = jax.random.split(key, 8)
    return {
        "w1": jax.random.normal(ks[0], (1, 20), jnp.float32),
        "b1": jax.random.normal(ks[1], (20,), jnp.float32),
        "w2": jax.random.normal(ks[2], (20, 64), jnp.float32),
        "b2": jax.random.normal(ks[3], (64,), jnp.float32),
        "w3": jax.random.normal(ks[4], (64, 20), jnp.float32),
        "b3": jax.random.normal(ks[5], (20,), jnp.float32),
        "w4": jax.random.normal(ks[6], (20, 1), jnp.float32),
        "b4": jax.random.normal(ks[7], (1,), jnp.float32),
    }


def line2_reference(xs, params):
    """Plain-JAX reference mirroring the PyTorch forward layer by layer."""
    f1 = xs @ params["w1"] + params["b1"]
    f2 = f1 @ params["w2"] + params["b2"]
    f3 = f2 @ params["w3"] + params["b3"]
    f4 = f3 @ params["w4"] + params["b4"]
    return f4


if __name__ == "__main__":
    key = jax.random.PRNGKey(0)
    params = init_params(key)

    # Same input the original script builds: (41, 1), values in [-1, 1].
    xs = (jnp.arange(-20, 21, dtype=jnp.float32)[:, None]) / 20.0

    out = jax.block_until_ready(line2_forward(xs, params))
    ref = line2_reference(xs, params)
    assert out.shape == ref.shape == (41, 1), out.shape
    scale = float(jnp.max(jnp.abs(ref)))
    err = float(jnp.max(jnp.abs(out - ref)))
    # Collapsing the affine chain reorders f32 rounding; check relative to the
    # problem scale (~hundreds, since weights are standard-normal).
    assert err <= 1e-4 * (1.0 + scale), (err, scale)

    # Larger batch to exercise the multi-tile (grid > 1) pipelined path.
    xs_big = jax.random.normal(jax.random.PRNGKey(1), (70_001, 1), jnp.float32)
    out_big = jax.block_until_ready(line2_forward(xs_big, params))
    ref_big = line2_reference(xs_big, params)
    assert out_big.shape == (70_001, 1), out_big.shape
    scale_b = float(jnp.max(jnp.abs(ref_big)))
    err_b = float(jnp.max(jnp.abs(out_big - ref_big)))
    assert err_b <= 1e-4 * (1.0 + scale_b), (err_b, scale_b)

    print("KERNEL_OK")
</pallas_src>

<mosaic_0001>
module attributes {stable_mosaic.version = 11 : i64} {
  func.func @_affine_kernel(%arg0: i32, %arg1: memref<1x1xf32, #tpu.memory_space<smem>>, %arg2: memref<1x1xf32, #tpu.memory_space<smem>>, %arg3: memref<8x128xf32, #tpu.memory_space<vmem>>, %arg4: memref<8x128xf32, #tpu.memory_space<vmem>>) attributes {dimension_semantics = [#tpu.dimension_semantics<parallel>], iteration_bounds = array<i64: 1>, scalar_prefetch = 0 : i64, scratch_operands = 0 : i64, tpu.core_type = #tpu.core_type<tc>, window_params = [{transform_indices = @transform_0, window_bounds = array<i64: 1, 1>}, {transform_indices = @transform_1, window_bounds = array<i64: 1, 1>}, {transform_indices = @transform_2, window_bounds = array<i64: 8, 128>}, {transform_indices = @transform_3, window_bounds = array<i64: 8, 128>}]} {
    %c0 = arith.constant 0 : index
    %c0_0 = arith.constant 0 : index
    %0 = vector.load %arg3[%c0, %c0_0] : memref<8x128xf32, #tpu.memory_space<vmem>>, vector<8x128xf32>
    %c0_1 = arith.constant 0 : index
    %c0_2 = arith.constant 0 : index
    %1 = memref.load %arg1[%c0_1, %c0_2] : memref<1x1xf32, #tpu.memory_space<smem>>
    %2 = vector.broadcast %1 : f32 to vector<8x128xf32>
    %3 = arith.mulf %0, %2 : vector<8x128xf32>
    %c0_3 = arith.constant 0 : index
    %c0_4 = arith.constant 0 : index
    %4 = memref.load %arg2[%c0_3, %c0_4] : memref<1x1xf32, #tpu.memory_space<smem>>
    %5 = vector.broadcast %4 : f32 to vector<8x128xf32>
    %6 = arith.addf %3, %5 : vector<8x128xf32>
    %c0_5 = arith.constant 0 : index
    %c0_6 = arith.constant 0 : index
    %7 = vector.load %arg4[%c0_5, %c0_6] : memref<8x128xf32, #tpu.memory_space<vmem>>, vector<8x128xf32>
    tpu.vector_store %arg4[%c0_5, %c0_6], %6 {strides = array<i32>} : memref<8x128xf32, #tpu.memory_space<vmem>>, vector<8x128xf32>,
    return
  }
  func.func @transform_0(%arg0: i32) -> (i32, i32) {
    %c0_i32 = arith.constant 0 : i32
    %c0_i32_0 = arith.constant 0 : i32
    %c0_i32_1 = arith.constant 0 : i32
    return %c0_i32, %c0_i32_0 : i32, i32
  }
  func.func @transform_1(%arg0: i32) -> (i32, i32) {
    %c0_i32 = arith.constant 0 : i32
    %c0_i32_0 = arith.constant 0 : i32
    %c0_i32_1 = arith.constant 0 : i32
    return %c0_i32, %c0_i32_0 : i32, i32
  }
  func.func @transform_2(%arg0: i32) -> (i32, i32) {
    %c0_i32 = arith.constant 0 : i32
    %c0_i32_0 = arith.constant 0 : i32
    return %arg0, %c0_i32 : i32, i32
  }
  func.func @transform_3(%arg0: i32) -> (i32, i32) {
    %c0_i32 = arith.constant 0 : i32
    %c0_i32_0 = arith.constant 0 : i32
    return %arg0, %c0_i32 : i32, i32
  }
}

</mosaic_0001>

<bundles_post_ra>
// kernel: tpu_custom_call.1
= control target key start
LH: loop header
LB: loop body
LE: loop exit
PB: predicated region body
PF: predicated region fallthrough
CT: control target
= control target key end

     0   :  { %10 = vsyncpa [#allocation5], 0  ;;  %s154_s0 = inlined_call_operand.<no memory space> [shape: f32[1,1], index: 0, kind: input, shape index: {}]   ;;  %s155_s1 = inlined_call_operand.<no memory space> [shape: f32[1,1], index: 1, kind: input, shape index: {}]   ;;  %s156_s2 = inlined_call_operand.hbm [shape: f32[8,128], index: 2, kind: input, shape index: {}]   ;;  %s157_s3 = inlined_call_operand.hbm [shape: f32[8,128], index: 3, kind: output, shape index: {}]  }
   0x1   :  { %11 = vsyncpa [#allocation6], 0  ;;  %s102_s12 = smov [#allocation4]   ;;  %s54_s16 = scalar_lea.hbm %s156_s2, 128 }
   0x2   :  { %s22_s13 = sshll.u32 %s102_s12, 4  ;;  %p55_p0 = scmp.ne.s32.totalorder %s156_s2, %s54_s16  ;;  %s23_s13 = int_to_ptr.vmem [resolvable:$true] %s22_s13 }
   0x3   :  { %p58_p1 = scmp.lt.u32.totalorder %s54_s16, %s156_s2 }
   0x5   :  { %p60_p2 = pnand %p58_p1, %p55_p0 }
   0x7   :  { %63 = shalt.err (!%p60_p2)
}
   0x8   :  { %s64_s21 = scalar_lea.vmem %s23_s13, 128  ;;  %p69_p4 = scmp.lt.s32.totalorder %s23_s13, %s23_s13 }
   0x9   :  { %p65_p3 = scmp.ne.s32.totalorder %s23_s13, %s64_s21  ;;  %p70_p5 = scmp.lt.s32.totalorder %s64_s21, %s64_s21 }
   0xb   :  { %p71_p6 = por %p70_p5, %p69_p4 }
   0xd   :  { %p72_p7 = pnand %p71_p6, %p65_p3 }
   0xf   :  { %75 = shalt.err (!%p72_p7)
}
  0x10   :  { %25 = dma.hbm_to_vmem [thread:$0]  %s156_s2, 128, %s23_s13, [#allocation5]  }
  0x11   :  { %98 = dma.done.wait [#allocation5], 128  }
  0x12   :  { %99 = vsyncadd [#allocation5], 4294967168  ;;  %v31_v0 = vstv %s154_s0  ;;  %v29_v1 = vld [vmem:[#allocation4] sm:$0xff]  ;;  %v34_v2 = vstv %s155_s1  ;;  %s103_s28 = smov [#allocation7]  }
  0x13   :  { %s43_s29 = sshll.u32 %s103_s28, 4  ;;  %v32_v3 = vmul.f32 %v31_v0, %v29_v1  ;;  %s44_s29 = int_to_ptr.vmem [resolvable:$true] %s43_s29 }
  0x14   :  { %s76_s30 = scalar_lea.vmem %s44_s29, 128  ;;  %p81_p9 = scmp.lt.s32.totalorder %s44_s29, %s44_s29 }
  0x15   :  { %v35_v4 = vadd.f32 %v34_v2, %v32_v3  ;;  %p77_p8 = scmp.ne.s32.totalorder %s44_s29, %s76_s30  ;;  %p82_p10 = scmp.lt.s32.totalorder %s76_s30, %s76_s30 }
  0x17   :  { %36 = vst [vmem:[#allocation7] sm:$0xff] %v35_v4  ;;  %p83_p11 = por %p82_p10, %p81_p9 }
  0x19   :  { %p84_p12 = pnand %p83_p11, %p77_p8 }
  0x1b   :  { %87 = shalt.err (!%p84_p12)
}
  0x1c   :  { %s88_s4 = scalar_lea.hbm %s157_s3, 128 }
  0x1d   :  { %p89_p13 = scmp.ne.s32.totalorder %s157_s3, %s88_s4  ;;  %p92_p0 = scmp.lt.u32.totalorder %s88_s4, %s157_s3 }
  0x1f   :  { %p94_p1 = pnand %p92_p0, %p89_p13 }
  0x21   :  { %97 = shalt.err (!%p94_p1)
}
  0x22   :  { %46 = dma.vmem_to_hbm [thread:$0]  %s44_s29, 128, %s157_s3, [#allocation6]  }
  0x23   :  { %100 = dma.done.wait [#allocation6], 128  }
  0x24   :  { %101 = vsyncadd [#allocation6], 4294967168 }
  0x25   :  { %50 = vsyncpa [#allocation5], 1 }
  0x26   :  { %51 = vsyncpa [#allocation6], 1 }

</bundles_post_ra>
